<compile_context>
chip_gen: v6e
topology: v6e:2x2x1
jax: 0.10.0
libtpu: 0.0.40
codegen_flags: <defaults>
</compile_context>

<pallas_src>
import functools
import math

import jax
import jax.numpy as jnp
from jax import lax
from jax.experimental import pallas as pl
from jax.experimental.pallas import tpu as pltpu

_INV_SQRT2 = 1.0 / math.sqrt(2.0)
_TANH_C = math.sqrt(2.0 / math.pi)


def _round_up(v, m):
    return (v + m - 1) // m * m


def _vmem_capacity_bytes():
    try:
        return int(pltpu.get_tpu_info().vmem_capacity_bytes)
    except Exception:
        return 64 * 2 ** 20            # conservative (v7x-sized) fallback


def _default_tm(T):
    phys = _vmem_capacity_bytes()
    tm = 512 if phys >= 100 * 2 ** 20 else 256    # v5e/v6e : v7x
    # Guarantee at least two token tiles so the (2, tiles) grid has >= 4
    # programs (lets megacore split work even at small T).
    if T > 8:
        tm = min(tm, _round_up(pl.cdiv(T, 2), 8))
    else:
        tm = 8
    return max(8, _round_up(min(tm, _round_up(T, 8)), 8))


def _ffn_kernel(x_ref, w1_ref, b1_ref, w2_ref, b2_ref, o_ref, *, approx_gelu):
    """One (branch, token-tile) step: o = x + Linear2(GELU(Linear1(x)))."""
    x = x_ref[...]                                        # (TM, D), native dtype

    # Linear 1 (D -> H): MXU consumes the weight dtype, accumulates in f32.
    h = jnp.dot(x.astype(w1_ref.dtype), w1_ref[...],
                preferred_element_type=jnp.float32)
    h = h + b1_ref[...].astype(jnp.float32)               # (1, H) broadcast add

    if approx_gelu:
        # tanh approximation: tanh runs on the EUP (its own VLIW issue slot).
        h = 0.5 * h * (1.0 + jnp.tanh(_TANH_C * (h + 0.044715 * h * h * h)))
    else:
        # Exact GELU (matches nn.GELU() default): 0.5*h*(1+erf(h/sqrt(2))).
        h = 0.5 * h * (1.0 + lax.erf(h * _INV_SQRT2))

    # Linear 2 (H -> D): f32 accumulation on the MXU.
    out = jnp.dot(h.astype(w2_ref.dtype), w2_ref[...],
                  preferred_element_type=jnp.float32)
    out = out + b2_ref[...].astype(jnp.float32)           # (1, D) broadcast add

    # Residual add in f32, single cast to the output dtype.
    o_ref[...] = (x.astype(jnp.float32) + out).astype(o_ref.dtype)


def _resident_spec(block_shape, index_map, single_buffer):
    """BlockSpec for VMEM-resident operands (constant along the token axis)."""
    if single_buffer:
        try:
            return pl.BlockSpec(block_shape, index_map,
                                pipeline_mode=pl.Buffered(1))
        except Exception:          # jax build without pipeline_mode support
            pass
    return pl.BlockSpec(block_shape, index_map)


def _ffn_stacked(xs, w1s, b1s, w2s, b2s, *, tm, approx_gelu,
                 single_buffer_weights):
    """xs: (G, T, D) stacked branches; weights stacked on the same leading axis."""
    G, T, D = xs.shape
    H = w1s.shape[-1]
    tiles = pl.cdiv(T, tm)          # partial last block is masked by Pallas

    # VMEM budget (weights counted once when single-buffered) + headroom.
    xb = xs.dtype.itemsize
    wb = w1s.dtype.itemsize
    wbuf = 1 if single_buffer_weights else 2
    est = (4 * tm * D * xb                          # x tile + out tile, 2 buffers each
           + wbuf * 2 * D * H * wb                  # W1, W2 (resident)
           + wbuf * (H + D) * b1s.dtype.itemsize    # biases
           + tm * H * 4 + 2 * tm * D * 4)           # f32 hidden / out / residual temps
    cap = min(int(0.65 * _vmem_capacity_bytes()), 96 * 2 ** 20)
    vmem_limit = int(min(cap, max(16 * 2 ** 20, int(1.5 * est))))

    return pl.pallas_call(
        functools.partial(_ffn_kernel, approx_gelu=approx_gelu),
        out_shape=jax.ShapeDtypeStruct((G, T, D), xs.dtype),
        grid_spec=pltpu.PrefetchScalarGridSpec(
            num_scalar_prefetch=0,
            grid=(G, tiles),        # branch axis outermost -> weights swap once
            in_specs=[
                pl.BlockSpec((None, tm, D), lambda b, i: (b, i, 0)),   # x tile
                _resident_spec((None, D, H), lambda b, i: (b, 0, 0),
                               single_buffer_weights),                 # W1
                _resident_spec((None, 1, H), lambda b, i: (b, 0, 0),
                               single_buffer_weights),                 # b1
                _resident_spec((None, H, D), lambda b, i: (b, 0, 0),
                               single_buffer_weights),                 # W2
                _resident_spec((None, 1, D), lambda b, i: (b, 0, 0),
                               single_buffer_weights),                 # b2
            ],
            out_specs=pl.BlockSpec((None, tm, D), lambda b, i: (b, i, 0)),
        ),
        compiler_params=pltpu.CompilerParams(
            dimension_semantics=("parallel", "parallel"),
            vmem_limit_bytes=vmem_limit),
    )(xs, w1s, b1s, w2s, b2s)


def _run_ffn(xs, w1s, b1s, w2s, b2s, *, tm, approx_gelu):
    try:
        return _ffn_stacked(xs, w1s, b1s, w2s, b2s, tm=tm,
                            approx_gelu=approx_gelu, single_buffer_weights=True)
    except Exception:
        # Fallback: default (double-buffered) resident operands.
        return _ffn_stacked(xs, w1s, b1s, w2s, b2s, tm=tm,
                            approx_gelu=approx_gelu, single_buffer_weights=False)


def feedforward(x, y, params, *, tm=None, approx_gelu=False, mxu_dtype=None):
    """Matches FeedForward.forward(x, y) -> (x + net_rgb(x), y + net_d(y)).

    mxu_dtype: e.g. jnp.bfloat16 to feed the MXU bf16 operands (f32 accumulate).
    approx_gelu: tanh-approximate GELU (EUP path); default exact erf (PyTorch).
    """
    B, N, D = x.shape

    def stacked_weights(names):
        w1 = jnp.stack([params[f"{n}_w1"] for n in names])
        b1 = jnp.stack([params[f"{n}_b1"].reshape(1, -1) for n in names])
        w2 = jnp.stack([params[f"{n}_w2"] for n in names])
        b2 = jnp.stack([params[f"{n}_b2"].reshape(1, -1) for n in names])
        if mxu_dtype is not None:
            w1, w2 = w1.astype(mxu_dtype), w2.astype(mxu_dtype)
        return w1, b1, w2, b2

    if x.shape == y.shape:
        # Fused path: both branches in one pallas_call.  The stack/unstack of
        # the activations is a cheap contiguous copy at this model's token
        # counts and buys one launch + overlapped weight DMA + a bigger grid.
        T = B * N
        tmm = tm if tm is not None else _default_tm(T)
        xs = jnp.stack([x.reshape(T, D), y.reshape(T, D)])
        w1, b1, w2, b2 = stacked_weights(("rgb", "d"))
        out = _run_ffn(xs, w1, b1, w2, b2, tm=tmm, approx_gelu=approx_gelu)
        return out[0].reshape(B, N, D), out[1].reshape(y.shape)

    # Different token counts per branch: run each through the same kernel (G=1).
    outs = []
    for v, name in ((x, "rgb"), (y, "d")):
        b_, n_, _ = v.shape
        T = b_ * n_
        tmm = tm if tm is not None else _default_tm(T)
        w1, b1, w2, b2 = stacked_weights((name,))
        o = _run_ffn(v.reshape(1, T, D), w1, b1, w2, b2,
                     tm=tmm, approx_gelu=approx_gelu)
        outs.append(o[0].reshape(b_, n_, D))
    return tuple(outs)


def _init_params(key, dim, hidden_dim, dtype=jnp.float32):
    """Deterministic parameter init (Kaiming-uniform-ish like torch Linear)."""
    ks = jax.random.split(key, 8)

    def lin(kw, kb, fan_in, fan_out):
        bound = 1.0 / math.sqrt(fan_in)
        w = jax.random.uniform(kw, (fan_in, fan_out), dtype, -bound, bound)
        b = jax.random.uniform(kb, (fan_out,), dtype, -bound, bound)
        return w, b

    rgb_w1, rgb_b1 = lin(ks[0], ks[1], dim, hidden_dim)
    rgb_w2, rgb_b2 = lin(ks[2], ks[3], hidden_dim, dim)
    d_w1, d_b1 = lin(ks[4], ks[5], dim, hidden_dim)
    d_w2, d_b2 = lin(ks[6], ks[7], hidden_dim, dim)
    return dict(rgb_w1=rgb_w1, rgb_b1=rgb_b1, rgb_w2=rgb_w2, rgb_b2=rgb_b2,
                d_w1=d_w1, d_b1=d_b1, d_w2=d_w2, d_b2=d_b2)


if __name__ == "__main__":
    key = jax.random.PRNGKey(0)
    # N=11 -> T=22 tokens: with two token tiles this exercises the masked
    # partial-last-block path (no host-side token padding anymore).
    B, N, DIM, HID = 2, 11, 32, 64

    kx, ky, kp = jax.random.split(key, 3)
    x = jax.random.normal(kx, (B, N, DIM), jnp.float32)
    y = jax.random.normal(ky, (B, N, DIM), jnp.float32)
    params = _init_params(kp, DIM, HID)

    # Exact path (erf GELU, f32 MXU operands): bit-comparable to the reference.
    out_x, out_y = feedforward(x, y, params)
    jax.block_until_ready((out_x, out_y))

    def ref_branch(v, w1, b1, w2, b2):
        h = v @ w1 + b1
        h = 0.5 * h * (1.0 + lax.erf(h / math.sqrt(2.0)))
        return v + (h @ w2 + b2)

    ref_x = ref_branch(x, params["rgb_w1"], params["rgb_b1"],
                       params["rgb_w2"], params["rgb_b2"])
    ref_y = ref_branch(y, params["d_w1"], params["d_b1"],
                       params["d_w2"], params["d_b2"])
    assert jnp.allclose(out_x, ref_x, atol=1e-5, rtol=1e-5)
    assert jnp.allclose(out_y, ref_y, atol=1e-5, rtol=1e-5)

    # Optional fast path: bf16 MXU operands + tanh GELU (EUP); looser check.
    fx, fy = feedforward(x, y, params, mxu_dtype=jnp.bfloat16, approx_gelu=True)
    jax.block_until_ready((fx, fy))
    assert jnp.allclose(fx, ref_x, atol=1e-1, rtol=1e-1)
    assert jnp.allclose(fy, ref_y, atol=1e-1, rtol=1e-1)

    print("KERNEL_OK")
</pallas_src>

<mosaic_0001>
module attributes {stable_mosaic.version = 11 : i64} {
  func.func @_ffn_kernel(%arg0: i32, %arg1: i32, %arg2: memref<1x16x32xf32, #tpu.memory_space<vmem>>, %arg3: memref<1x32x64xf32, #tpu.memory_space<vmem>>, %arg4: memref<1x1x64xf32, #tpu.memory_space<vmem>>, %arg5: memref<1x64x32xf32, #tpu.memory_space<vmem>>, %arg6: memref<1x1x32xf32, #tpu.memory_space<vmem>>, %arg7: memref<1x16x32xf32, #tpu.memory_space<vmem>>) attributes {dimension_semantics = [#tpu.dimension_semantics<parallel>, #tpu.dimension_semantics<parallel>], iteration_bounds = array<i64: 2, 2>, scalar_prefetch = 0 : i64, scratch_operands = 0 : i64, tpu.core_type = #tpu.core_type<tc>, window_params = [{transform_indices = @transform_0, window_bounds = array<i64: 1, 16, 32>}, {pipeline_mode = #tpu.pipeline_mode<synchronous>, transform_indices = @transform_1, window_bounds = array<i64: 1, 32, 64>}, {pipeline_mode = #tpu.pipeline_mode<synchronous>, transform_indices = @transform_2, window_bounds = array<i64: 1, 1, 64>}, {pipeline_mode = #tpu.pipeline_mode<synchronous>, transform_indices = @transform_3, window_bounds = array<i64: 1, 64, 32>}, {pipeline_mode = #tpu.pipeline_mode<synchronous>, transform_indices = @transform_4, window_bounds = array<i64: 1, 1, 32>}, {transform_indices = @transform_5, window_bounds = array<i64: 1, 16, 32>}]} {
    %c0 = arith.constant 0 : index
    %c0_0 = arith.constant 0 : index
    %c0_1 = arith.constant 0 : index
    %0 = vector.load %arg2[%c0, %c0_0, %c0_1] : memref<1x16x32xf32, #tpu.memory_space<vmem>>, vector<1x16x32xf32>
    %1 = vector.shape_cast %0 : vector<1x16x32xf32> to vector<16x32xf32>
    %c0_2 = arith.constant 0 : index
    %c0_3 = arith.constant 0 : index
    %c0_4 = arith.constant 0 : index
    %2 = vector.load %arg3[%c0_2, %c0_3, %c0_4] : memref<1x32x64xf32, #tpu.memory_space<vmem>>, vector<1x32x64xf32>
    %3 = vector.shape_cast %2 : vector<1x32x64xf32> to vector<32x64xf32>
    %cst = arith.constant dense<0.000000e+00> : vector<16x64xf32>
    %4 = tpu.matmul %1, %3, %cst {dimension_numbers = #tpu.dot_dimension_numbers<[1], [0], [0], [1], [0, 0, 1, 1], [], []>} : vector<16x32xf32>, vector<32x64xf32>, vector<16x64xf32> -> vector<16x64xf32>
    %c0_5 = arith.constant 0 : index
    %c0_6 = arith.constant 0 : index
    %c0_7 = arith.constant 0 : index
    %5 = vector.load %arg4[%c0_5, %c0_6, %c0_7] : memref<1x1x64xf32, #tpu.memory_space<vmem>>, vector<1x1x64xf32>
    %6 = vector.shape_cast %5 : vector<1x1x64xf32> to vector<1x64xf32>
    %7 = vector.broadcast %6 : vector<1x64xf32> to vector<16x64xf32>
    %8 = arith.addf %4, %7 : vector<16x64xf32>
    %cst_8 = arith.constant 5.000000e-01 : f32
    %9 = vector.broadcast %cst_8 : f32 to vector<16x64xf32>
    %10 = arith.mulf %9, %8 : vector<16x64xf32>
    %cst_9 = arith.constant 0.707106769 : f32
    %11 = vector.broadcast %cst_9 : f32 to vector<16x64xf32>
    %12 = arith.mulf %8, %11 : vector<16x64xf32>
    %13 = math.erf %12 : vector<16x64xf32>
    %cst_10 = arith.constant 1.000000e+00 : f32
    %14 = vector.broadcast %cst_10 : f32 to vector<16x64xf32>
    %15 = arith.addf %14, %13 : vector<16x64xf32>
    %16 = arith.mulf %10, %15 : vector<16x64xf32>
    %c0_11 = arith.constant 0 : index
    %c0_12 = arith.constant 0 : index
    %c0_13 = arith.constant 0 : index
    %17 = vector.load %arg5[%c0_11, %c0_12, %c0_13] : memref<1x64x32xf32, #tpu.memory_space<vmem>>, vector<1x64x32xf32>
    %18 = vector.shape_cast %17 : vector<1x64x32xf32> to vector<64x32xf32>
    %cst_14 = arith.constant dense<0.000000e+00> : vector<16x32xf32>
    %19 = tpu.matmul %16, %18, %cst_14 {dimension_numbers = #tpu.dot_dimension_numbers<[1], [0], [0], [1], [0, 0, 1, 1], [], []>} : vector<16x64xf32>, vector<64x32xf32>, vector<16x32xf32> -> vector<16x32xf32>
    %c0_15 = arith.constant 0 : index
    %c0_16 = arith.constant 0 : index
    %c0_17 = arith.constant 0 : index
    %20 = vector.load %arg6[%c0_15, %c0_16, %c0_17] : memref<1x1x32xf32, #tpu.memory_space<vmem>>, vector<1x1x32xf32>
    %21 = vector.shape_cast %20 : vector<1x1x32xf32> to vector<1x32xf32>
    %22 = vector.broadcast %21 : vector<1x32xf32> to vector<16x32xf32>
    %23 = arith.addf %19, %22 : vector<16x32xf32>
    %24 = arith.addf %1, %23 : vector<16x32xf32>
    %c0_18 = arith.constant 0 : index
    %c0_19 = arith.constant 0 : index
    %c0_20 = arith.constant 0 : index
    %25 = vector.load %arg7[%c0_18, %c0_19, %c0_20] : memref<1x16x32xf32, #tpu.memory_space<vmem>>, vector<1x16x32xf32>
    %26 = vector.shape_cast %25 : vector<1x16x32xf32> to vector<16x32xf32>
    %27 = vector.shape_cast %24 : vector<16x32xf32> to vector<1x16x32xf32>
    tpu.vector_store %arg7[%c0_18, %c0_19, %c0_20], %27 {strides = array<i32>} : memref<1x16x32xf32, #tpu.memory_space<vmem>>, vector<1x16x32xf32>,
    return
  }
  func.func @transform_0(%arg0: i32, %arg1: i32) -> (i32, i32, i32) {
    %c0_i32 = arith.constant 0 : i32
    %c0_i32_0 = arith.constant 0 : i32
    return %arg0, %arg1, %c0_i32 : i32, i32, i32
  }
  func.func @transform_1(%arg0: i32, %arg1: i32) -> (i32, i32, i32) {
    %c0_i32 = arith.constant 0 : i32
    %c0_i32_0 = arith.constant 0 : i32
    %c0_i32_1 = arith.constant 0 : i32
    return %arg0, %c0_i32, %c0_i32_0 : i32, i32, i32
  }
  func.func @transform_2(%arg0: i32, %arg1: i32) -> (i32, i32, i32) {
    %c0_i32 = arith.constant 0 : i32
    %c0_i32_0 = arith.constant 0 : i32
    %c0_i32_1 = arith.constant 0 : i32
    return %arg0, %c0_i32, %c0_i32_0 : i32, i32, i32
  }
  func.func @transform_3(%arg0: i32, %arg1: i32) -> (i32, i32, i32) {
    %c0_i32 = arith.constant 0 : i32
    %c0_i32_0 = arith.constant 0 : i32
    %c0_i32_1 = arith.constant 0 : i32
    return %arg0, %c0_i32, %c0_i32_0 : i32, i32, i32
  }
  func.func @transform_4(%arg0: i32, %arg1: i32) -> (i32, i32, i32) {
    %c0_i32 = arith.constant 0 : i32
    %c0_i32_0 = arith.constant 0 : i32
    %c0_i32_1 = arith.constant 0 : i32
    return %arg0, %c0_i32, %c0_i32_0 : i32, i32, i32
  }
  func.func @transform_5(%arg0: i32, %arg1: i32) -> (i32, i32, i32) {
    %c0_i32 = arith.constant 0 : i32
    %c0_i32_0 = arith.constant 0 : i32
    return %arg0, %arg1, %c0_i32 : i32, i32, i32
  }
}

module attributes {stable_mosaic.version = 11 : i64} {
  func.func @_ffn_kernel(%arg0: i32, %arg1: i32, %arg2: memref<1x16x32xf32, #tpu.memory_space<vmem>>, %arg3: memref<1x32x64xf32, #tpu.memory_space<vmem>>, %arg4: memref<1x1x64xf32, #tpu.memory_space<vmem>>, %arg5: memref<1x64x32xf32, #tpu.memory_space<vmem>>, %arg6: memref<1x1x32xf32, #tpu.memory_space<vmem>>, %arg7: memref<1x16x32xf32, #tpu.memory_space<vmem>>) attributes {dimension_semantics = [#tpu.dimension_semantics<parallel>, #tpu.dimension_semantics<parallel>], iteration_bounds = array<i64: 2, 2>, scalar_prefetch = 0 : i64, scratch_operands = 0 : i64, tpu.core_type = #tpu.core_type<tc>, window_params = [{transform_indices = @transform_0, window_bounds = array<i64: 1, 16, 32>}, {transform_indices = @transform_1, window_bounds = array<i64: 1, 32, 64>}, {transform_indices = @transform_2, window_bounds = array<i64: 1, 1, 64>}, {transform_indices = @transform_3, window_bounds = array<i64: 1, 64, 32>}, {transform_indices = @transform_4, window_bounds = array<i64: 1, 1, 32>}, {transform_indices = @transform_5, window_bounds = array<i64: 1, 16, 32>}]} {
    %c0 = arith.constant 0 : index
    %c0_0 = arith.constant 0 : index
    %c0_1 = arith.constant 0 : index
    %0 = vector.load %arg2[%c0, %c0_0, %c0_1] : memref<1x16x32xf32, #tpu.memory_space<vmem>>, vector<1x16x32xf32>
    %1 = vector.shape_cast %0 : vector<1x16x32xf32> to vector<16x32xf32>
    %c0_2 = arith.constant 0 : index
    %c0_3 = arith.constant 0 : index
    %c0_4 = arith.constant 0 : index
    %2 = vector.load %arg3[%c0_2, %c0_3, %c0_4] : memref<1x32x64xf32, #tpu.memory_space<vmem>>, vector<1x32x64xf32>
    %3 = vector.shape_cast %2 : vector<1x32x64xf32> to vector<32x64xf32>
    %cst = arith.constant dense<0.000000e+00> : vector<16x64xf32>
    %4 = tpu.matmul %1, %3, %cst {dimension_numbers = #tpu.dot_dimension_numbers<[1], [0], [0], [1], [0, 0, 1, 1], [], []>} : vector<16x32xf32>, vector<32x64xf32>, vector<16x64xf32> -> vector<16x64xf32>
    %c0_5 = arith.constant 0 : index
    %c0_6 = arith.constant 0 : index
    %c0_7 = arith.constant 0 : index
    %5 = vector.load %arg4[%c0_5, %c0_6, %c0_7] : memref<1x1x64xf32, #tpu.memory_space<vmem>>, vector<1x1x64xf32>
    %6 = vector.shape_cast %5 : vector<1x1x64xf32> to vector<1x64xf32>
    %7 = vector.broadcast %6 : vector<1x64xf32> to vector<16x64xf32>
    %8 = arith.addf %4, %7 : vector<16x64xf32>
    %cst_8 = arith.constant 5.000000e-01 : f32
    %9 = vector.broadcast %cst_8 : f32 to vector<16x64xf32>
    %10 = arith.mulf %9, %8 : vector<16x64xf32>
    %cst_9 = arith.constant 0.707106769 : f32
    %11 = vector.broadcast %cst_9 : f32 to vector<16x64xf32>
    %12 = arith.mulf %8, %11 : vector<16x64xf32>
    %13 = math.erf %12 : vector<16x64xf32>
    %cst_10 = arith.constant 1.000000e+00 : f32
    %14 = vector.broadcast %cst_10 : f32 to vector<16x64xf32>
    %15 = arith.addf %14, %13 : vector<16x64xf32>
    %16 = arith.mulf %10, %15 : vector<16x64xf32>
    %c0_11 = arith.constant 0 : index
    %c0_12 = arith.constant 0 : index
    %c0_13 = arith.constant 0 : index
    %17 = vector.load %arg5[%c0_11, %c0_12, %c0_13] : memref<1x64x32xf32, #tpu.memory_space<vmem>>, vector<1x64x32xf32>
    %18 = vector.shape_cast %17 : vector<1x64x32xf32> to vector<64x32xf32>
    %cst_14 = arith.constant dense<0.000000e+00> : vector<16x32xf32>
    %19 = tpu.matmul %16, %18, %cst_14 {dimension_numbers = #tpu.dot_dimension_numbers<[1], [0], [0], [1], [0, 0, 1, 1], [], []>} : vector<16x64xf32>, vector<64x32xf32>, vector<16x32xf32> -> vector<16x32xf32>
    %c0_15 = arith.constant 0 : index
    %c0_16 = arith.constant 0 : index
    %c0_17 = arith.constant 0 : index
    %20 = vector.load %arg6[%c0_15, %c0_16, %c0_17] : memref<1x1x32xf32, #tpu.memory_space<vmem>>, vector<1x1x32xf32>
    %21 = vector.shape_cast %20 : vector<1x1x32xf32> to vector<1x32xf32>
    %22 = vector.broadcast %21 : vector<1x32xf32> to vector<16x32xf32>
    %23 = arith.addf %19, %22 : vector<16x32xf32>
    %24 = arith.addf %1, %23 : vector<16x32xf32>
    %c0_18 = arith.constant 0 : index
    %c0_19 = arith.constant 0 : index
    %c0_20 = arith.constant 0 : index
    %25 = vector.load %arg7[%c0_18, %c0_19, %c0_20] : memref<1x16x32xf32, #tpu.memory_space<vmem>>, vector<1x16x32xf32>
    %26 = vector.shape_cast %25 : vector<1x16x32xf32> to vector<16x32xf32>
    %27 = vector.shape_cast %24 : vector<16x32xf32> to vector<1x16x32xf32>
    tpu.vector_store %arg7[%c0_18, %c0_19, %c0_20], %27 {strides = array<i32>} : memref<1x16x32xf32, #tpu.memory_space<vmem>>, vector<1x16x32xf32>,
    return
  }
  func.func @transform_0(%arg0: i32, %arg1: i32) -> (i32, i32, i32) {
    %c0_i32 = arith.constant 0 : i32
    %c0_i32_0 = arith.constant 0 : i32
    return %arg0, %arg1, %c0_i32 : i32, i32, i32
  }
  func.func @transform_1(%arg0: i32, %arg1: i32) -> (i32, i32, i32) {
    %c0_i32 = arith.constant 0 : i32
    %c0_i32_0 = arith.constant 0 : i32
    %c0_i32_1 = arith.constant 0 : i32
    return %arg0, %c0_i32, %c0_i32_0 : i32, i32, i32
  }
  func.func @transform_2(%arg0: i32, %arg1: i32) -> (i32, i32, i32) {
    %c0_i32 = arith.constant 0 : i32
    %c0_i32_0 = arith.constant 0 : i32
    %c0_i32_1 = arith.constant 0 : i32
    return %arg0, %c0_i32, %c0_i32_0 : i32, i32, i32
  }
  func.func @transform_3(%arg0: i32, %arg1: i32) -> (i32, i32, i32) {
    %c0_i32 = arith.constant 0 : i32
    %c0_i32_0 = arith.constant 0 : i32
    %c0_i32_1 = arith.constant 0 : i32
    return %arg0, %c0_i32, %c0_i32_0 : i32, i32, i32
  }
  func.func @transform_4(%arg0: i32, %arg1: i32) -> (i32, i32, i32) {
    %c0_i32 = arith.constant 0 : i32
    %c0_i32_0 = arith.constant 0 : i32
    %c0_i32_1 = arith.constant 0 : i32
    return %arg0, %c0_i32, %c0_i32_0 : i32, i32, i32
  }
  func.func @transform_5(%arg0: i32, %arg1: i32) -> (i32, i32, i32) {
    %c0_i32 = arith.constant 0 : i32
    %c0_i32_0 = arith.constant 0 : i32
    return %arg0, %arg1, %c0_i32 : i32, i32, i32
  }
}

</mosaic_0001>

<bundles_post_ra>
// kernel: tpu_custom_call.1
= control target key start
LH: loop header
LB: loop body
LE: loop exit
PB: predicated region body
PF: predicated region fallthrough
CT: control target
= control target key end

     0   :  { %s1205_s18 = smov 0   ;;  %s1207_s19 = smov 0   ;;  %s1356_s0 = inlined_call_operand.vmem [shape: f32[2,22,32], index: 0, kind: input, shape index: {}]   ;;  %s1357_s1 = inlined_call_operand.vmem [shape: f32[2,32,64], index: 1, kind: input, shape index: {}]   ;;  %s1358_s2 = inlined_call_operand.vmem [shape: f32[2,1,64], index: 2, kind: input, shape index: {}]   ;;  %s1359_s3 = inlined_call_operand.vmem [shape: f32[2,64,32], index: 3, kind: input, shape index: {}]   ;;  %s1360_s4 = inlined_call_operand.vmem [shape: f32[2,1,32], index: 4, kind: input, shape index: {}]   ;;  %s1361_s5 = inlined_call_operand.vmem [shape: f32[2,22,32], index: 5, kind: output, shape index: {}]  }
   0x1   :  { %s1209_s20 = smov 0   ;;  %s1211_s21 = smov 0  }
   0x2   :  { %s1213_s22 = smov 0   ;;  %s1215_s23 = smov 0  }
   0x3   :  { %s1217_s24 = smov 0  }
   0x4 LB: > { %s24_s25 = sadd.s32 1, %s1133_s22  ;;  %s27_s26 = sadd.s32 1, %s1137_s23  ;;  %s1141_s24 = sphi %s1217_s24, %s15_s24   ;;  %s1137_s23 = sphi %s1215_s23, %s1368_s23   ;;  %s1133_s22 = sphi %s1213_s22, %s1367_s22   ;;  %s1129_s21 = sphi %s1211_s21, %s1366_s21   ;;  %s1125_s20 = sphi %s1209_s20, %s1365_s20   ;;  %s1121_s19 = sphi %s1207_s19, %s1364_s19   ;;  %s1117_s18 = sphi %s1205_s18, %s1363_s18  }
   0x5   : > { %p25_p0 = scmp.ge.s32.totalorder %s24_s25, 2  ;;  %s844_s27 = sadd.s32 4294967295, %s1141_s24  }
   0x6   : > { %p178_p1 = scmp.ne.s32.totalorder %s1121_s19, %s1117_s18  ;;  %p179_p2 = scmp.eq.s32.totalorder %s844_s27, 3 }
   0x7   : > { %s1370_s25 = smov (%p25_p0, %s24_s25), 0  ;;  %s1372_s26 = smov (!%p25_p0, %s27_s26), %s1137_s23 }
   0x8   : > { %s164_s28 = ssub.s32 %s1133_s22, %s1370_s25  ;;  %p29_p3 = scmp.ge.s32.totalorder %s1372_s26, 2 }
   0x9   : > { %p848_p4 = scmp.ge.s32.totalorder %s1141_s24, 1  ;;  %p1249_p5 = por %p179_p2, %p178_p1 }
   0xa   : > { %p252_p6 = scmp.lt.s32.totalorder %s1141_s24, 5  ;;  %s1374_s26 = smov (%p29_p3, %s1372_s26), 0 }
   0xb   : > { %s163_s30 = ssub.s32 %s1137_s23, %s1374_s26  ;;  %s168_s7 = sadd.s32 1, %s1121_s19 }
   0xc   : > { %p253_p7 = pnand %p848_p4, %p252_p6  ;;  %s165_s6 = sor.u32 %s164_s28, %s163_s30 }
   0xd   : > { %p166_p8 = scmp.eq.s32.totalorder %s165_s6, 0  ;;  %p308_p9 = scmp.lt.s32.totalorder (!%p253_p7), %s1129_s21, 1 }
   0xe   : > { %256 = sbr.rel (%p253_p7) target bundleno = 489 (0x1e9), region = 40  ;;  %s1263_s9 = sshll.u32 (!%p253_p7), %s1125_s20, 1 }
   0xf   : > { %s1260_s8 = scalar_select %p166_p8, %s1121_s19, %s168_s7  }
  0x10   : > { %p310_p10 = scmp.lt.s32.totalorder (!%p253_p7), %s1263_s9, 2  ;;  %s300_s27 = sand.u32 (!%p253_p7), 1, %s1117_s18  }
  0x11   : > { %s849_s28 = sshll.u32 (!%p253_p7), %s300_s27, 4 }
  0x13   : > { %s1267_s10 = scalar_select %p308_p9, %s1129_s21, 1  ;;  %vm355_vm0 = vcmask 261120   ;;  %vm462_vm1 = vcmask 523264  }
  0x14   : > { %s311_s11 = scalar_select %p310_p10, %s1263_s9, 2 }
  0x15   : > { %s879_s12 = sshll.u32 %s1267_s10, 5  ;;  %s929_s13 = smul.u32 3, %s1267_s10 }
  0x16   : > { %s325_s16 = scalar_lea.vmem %s1357_s1, %s879_s12  ;;  %s880_s6 = sshll.u32 %s1267_s10, 6 }
  0x17   : > { %v347_v0 = vld [vmem:[%s325_s16 + $0x18] sm:$0xff]  ;;  %v346_v1 = vld [vmem:[%s325_s16 + $0x10] sm:$0xff]  ;;  %s313_s17 = sadd.s32 %s929_s13, %s311_s11  ;;  %v345_v2 = vld [vmem:[%s325_s16 + $0x8] sm:$0xff]  ;;  %s333_s12 = scalar_lea.vmem %s1359_s3, %s880_s6 }
  0x18   : > { %899 = vmatprep.subr.mxu0 %v347_v0  ;;  %s851_s20 = sshll.u32 %s313_s17, 3  ;;  %v344_v4 = vld [vmem:[%s325_s16] sm:$0xff]  ;;  %v454_v6 = vld [vmem:[%s333_s12 + $0x38] sm:$0xff]  ;;  %v453_v7 = vld [vmem:[%s333_s12 + $0x30] sm:$0xff]  ;;  %s328_s15 = scalar_lea.vmem %s1358_s2, %s1267_s10 }
  0x19   : > { %900 = vmatpush3.msra.mxu0 %v347_v0  ;;  %s315_s30 = scalar_lea.vmem %s1356_s0, %s851_s20  ;;  %910 = vmatprep.subr.mxu1 %v454_v6  ;;  %v452_v8 = vld [vmem:[%s333_s12 + $0x28] sm:$0xff]  ;;  %v451_v9 = vld [vmem:[%s333_s12 + $0x20] sm:$0xff]  ;;  %v450_v10 = vld [vmem:[%s333_s12 + $0x18] sm:$0xff]  ;;  %s336_s20 = scalar_lea.vmem %s1360_s4, %s1267_s10 }
  0x1a   : > { %901 = vmatprep.subr.mxu0 %v346_v1  ;;  %v1278_v3 = vld [vmem:[%s315_s30] sm:$0xff]  ;;  %v343_v5 = vld [vmem:[%s315_s30 + $0x8] sm:$0xff]  ;;  %911 = vmatpush3.msra.mxu1 %v454_v6  ;;  %v449_v11 = vld [vmem:[%s333_s12 + $0x10] sm:$0xff]  ;;  %s1296_s30 = scalar_lea.vmem [#allocation2], %s849_s28   ;;  %s556_s18 = ssub.s32 (%p1249_p5), 3, %s1263_s9 }
  0x1b   : > { %902 = vmatpush3.msra.mxu0 %v346_v1  ;;  %907 = vmatprep.mubr.msk.f32.mxu0 %vm355_vm0, %v1278_v3  ;;  %v448_v12 = vld [vmem:[%s333_s12 + $0x8] sm:$0xff]  ;;  %v447_v13 = vld [vmem:[%s333_s12] sm:$0xff]  ;;  %s930_s10 = smul.u32 (%p1249_p5), 3, %s1129_s21  ;;  %p557_p11 = scmp.lt.s32.totalorder (%p1249_p5), %s556_s18, 2 }
  0x1c   : > { %903 = vmatprep.subr.mxu0 %v345_v2  ;;  %912 = vmatprep.subr.mxu1 %v453_v7  ;;  %v856_v14 = vld [vmem:[%s328_s15] ss:$0 sm:$0xff] }
  0x1d   : > { %904 = vmatpush3.msra.mxu0 %v345_v2  ;;  %913 = vmatpush3.msra.mxu1 %v453_v7  ;;  %v859_v29 = vld [vmem:[%s336_s20] ss:$0 sm:$0xff]  ;;  %s562_s6 = sadd.s32 (%p1249_p5), %s930_s10, %s1263_s9 }
  0x1e   : > { %905 = vmatprep.subr.mxu0 %v344_v4  ;;  %914 = vmatprep.subr.mxu1 %v452_v8  ;;  %s866_s7 = sshll.u32 (%p1249_p5), %s562_s6, 3 }
  0x1f   : > { %906 = vmatpush3.msra.mxu0 %v344_v4  ;;  %915 = vmatpush3.msra.mxu1 %v452_v8  ;;  %s1314_s14 = scalar_lea.vmem (%p1249_p5), %s1361_s5, %s866_s7  }
  0x20   : > { %908 = vmatmul.mubr.msk.f32.vlgmr.msra.gmra.mxu0 %vm355_vm0, %v343_v5  ;;  %916 = vmatprep.subr.mxu1 %v451_v9 }
  0x21   : > { %917 = vmatpush3.msra.mxu1 %v451_v9 }
  0x22   : > { %918 = vmatprep.subr.mxu1 %v450_v10 }
  0x23   : > { %919 = vmatpush3.msra.mxu1 %v450_v10 }
  0x24   : > { %920 = vmatprep.subr.mxu1 %v449_v11 }
  0x25   : > { %921 = vmatpush3.msra.mxu1 %v449_v11 }
  0x26   : > { %922 = vmatprep.subr.mxu1 %v448_v12 }
  0x27   : > { %923 = vmatpush3.msra.mxu1 %v448_v12 }
  0x28   : > { %924 = vmatprep.subr.mxu1 %v447_v13 }
  0x29   : > { %925 = vmatpush3.msra.mxu1 %v447_v13 }
  0xe0   : > { %v909_v15 = vpop.f32.mrf.mxu0 }
  0xe1   : > { %v434_v16 = vadd.f32 %v909_v15, %v856_v14 }
  0xe2   : > { %v428_v17 = vpop.f32.mrf.mxu0 }
  0xe3   : > { %v440_v18 = vmul.f32 0.70710677, %v434_v16  ;;  %v429_v19 = vadd.f32 %v856_v14, %v428_v17  ;;  %v438_v26 = vmul.f32 0.5, %v434_v16 }
  0xe5   : > { %1051 = verf.f32 %v440_v18  ;;  %v439_v20 = vmul.f32 0.70710677, %v429_v19  ;;  %v437_v24 = vmul.f32 0.5, %v429_v19 }
  0xe7   : > { %1053 = verf.f32 %v439_v20 }
  0xf2   : > { %v1052_v21 = vpop.eup %1051 }
  0xf3   : > { %v444_v23 = vadd.f32 1.0, %v1052_v21 }
  0xf4   : > { %v1054_v22 = vpop.eup %1053 }
  0xf5   : > { %v443_v25 = vadd.f32 1.0, %v1054_v22  ;;  %v446_v28 = vmul.f32 %v444_v23, %v438_v26 }
  0xf7   : > { %v445_v27 = vmul.f32 %v443_v25, %v437_v24 }
  0xf9   : > { %926 = vmatprep.mubr.msk.f32.mxu1 %vm462_vm1, %v445_v27 }
  0xfa   : > { %927 = vmatmul.mubr.msk.f32.vlgmr.msra.gmra.mxu1 %vm462_vm1, %v446_v28 }
 0x1ba   : > { %v928_v30 = vpop.f32.mrf.mxu1 }
 0x1bb   : > { %v541_v31 = vadd.f32 %v928_v30, %v859_v29 }
 0x1bc   : > { %v535_v32 = vpop.f32.mrf.mxu1 }
 0x1bd   : > { %v545_v33 = vadd.f32 %v541_v31, %v343_v5  ;;  %v536_v34 = vadd.f32 %v859_v29, %v535_v32  ;;  %554 = sbr.rel (!%p1249_p5) target bundleno = 489 (0x1e9), region = 44 }
 0x1bf   : > { %547 = vst.msk [vmem:[%s1296_s30 + $0x8] sm:$0xff] %vm355_vm0, %v545_v33  ;;  %v544_v35 = vadd.f32 %v536_v34, %v1278_v3 }
 0x1c1   : > { %546 = vst.msk [vmem:[%s1296_s30] sm:$0xff] %vm355_vm0, %v544_v35 }
 0x1c2   : > { %s1376_s18 = smov (!%p557_p11, %s556_s18), 2 }
 0x1c3   : > { %s864_s11 = sshll.u32 %s1376_s18, 7 }
 0x1c4   : > { %p867_p12 = scmp.eq.s32.totalorder %s864_s11, 0 }
 0x1c5   : > { %s1317_s29 = sshrl.u32 (!%p867_p12), %s1376_s18, 1 }
 0x1c6   : > { %567 = sbr.rel (%p867_p12) target bundleno = 489 (0x1e9), region = 48  ;;  %p868_p13 = scmp.le.s32.totalorder (!%p867_p12), %s1317_s29, 0 }
 0x1cb   : > { %753 = sbr.rel (%p868_p13) target bundleno = 472 (0x1d8), region = 136  ;;  %s1143_s21 = smov (!%p868_p13), %s1314_s14  }
 0x1cc   : > { %s1147_s9 = smov (!%p868_p13), %s1296_s30   ;;  %s1151_s15 = smov (!%p868_p13), 0  }
 0x1cd   : > { %s1155_s16 = smov (!%p868_p13), 0  }
 0x1d0 LB: >> { %v632_v36 = vld [vmem:[%s1149_s9] sm:$0xff]  ;;  %v634_v37 = vld [vmem:[%s1149_s9 + $0x8] sm:$0xff]  ;;  %s636_s17 = sadd.s32 1, %s1153_s15  ;;  %s626_s16 = sadd.s32 1, %s1157_s16   ;;  %s1157_s16 = sphi %s1155_s16, %s626_s16   ;;  %s1153_s15 = sphi %s1151_s15, %s1152_s15   ;;  %s1149_s9 = sphi %s1147_s9, %s641_s9   ;;  %s1145_s21 = sphi %s1143_s21, %s642_s21  }
 0x1d1   : >> { %633 = vst [vmem:[%s1145_s21] sm:$0xff] %v632_v36  ;;  %635 = vst [vmem:[%s1145_s21 + $0x8] sm:$0xff] %v634_v37  ;;  %p637_p0 = scmp.ge.s32.totalorder %s636_s17, %s1317_s29  ;;  %p625_p1 = scmp.ge.s32.totalorder %s626_s16, %s1317_s29 }
 0x1d3   : >> { %s1378_s17 = smov (%p637_p0, %s636_s17), 0  ;;  %628 = sbr.rel (!%p625_p1) target bundleno = 464 (0x1d0), region = 142 }
 0x1d4   : >> { %s869_s20 = sshll.u32 %s1378_s17, 4  ;;  %s1152_s15 = smov %s1378_s17  }
 0x1d5   : >> { %s641_s9 = scalar_lea.vmem %s1296_s30, %s869_s20 [#allocation2]   ;;  %s642_s21 = scalar_lea.vmem %s1314_s14, %s869_s20  }
 0x1d8 PF: > { %s1327_s27 = sand.u32 1, %s1376_s18   ;;  %s881_s28 = sshll.u32 %s1317_s29, 4 }
 0x1d9   : > { %s647_s10 = scalar_lea.vmem %s1296_s30, %s881_s28 [#allocation2]   ;;  %s649_s6 = scalar_lea.vmem %s1314_s14, %s881_s28  }
 0x1da   : > { %p874_p2 = scmp.le.s32.totalorder %s1327_s27, 0 }
 0x1db   : > { %s1159_s7 = smov (!%p874_p2), %s649_s6   ;;  %s1163_s11 = smov (!%p874_p2), %s647_s10  }
 0x1dc   : > { %767 = sbr.rel (%p874_p2) target bundleno = 489 (0x1e9), region = 147  ;;  %s1167_s12 = smov (!%p874_p2), 0  }
 0x1dd   : > { %s1171_s13 = smov (!%p874_p2), 0  }
 0x1e1 LB: >> { %v659_v38 = vld [vmem:[%s1165_s11] sm:$0xff]  ;;  %s661_s18 = sadd.s32 1, %s1169_s12  ;;  %s653_s13 = sadd.s32 1, %s1173_s13   ;;  %s1173_s13 = sphi %s1171_s13, %s653_s13   ;;  %s1169_s12 = sphi %s1167_s12, %s1168_s12   ;;  %s1165_s11 = sphi %s1163_s11, %s666_s11   ;;  %s1161_s7 = sphi %s1159_s7, %s667_s7  }
 0x1e2   : >> { %660 = vst [vmem:[%s1161_s7] sm:$0xff] %v659_v38  ;;  %p662_p3 = scmp.ge.s32.totalorder %s661_s18, %s1327_s27  ;;  %p652_p4 = scmp.ge.s32.totalorder %s653_s13, %s1327_s27 }
 0x1e4   : >> { %s1380_s18 = smov (%p662_p3, %s661_s18), 0  ;;  %655 = sbr.rel (!%p652_p4) target bundleno = 481 (0x1e1), region = 153 }
 0x1e5   : >> { %s875_s30 = sshll.u32 %s1380_s18, 3  ;;  %s1168_s12 = smov %s1380_s18  }
 0x1e6   : >> { %s666_s11 = scalar_lea.vmem %s647_s10, %s875_s30 [#allocation2]   ;;  %s667_s7 = scalar_lea.vmem %s649_s6, %s875_s30  }
 0x1e9 PF: > { %s15_s24 = sadd.s32 1, %s1141_s24   ;;  %s1363_s18 = smov %s1121_s19 }
 0x1ea   : > { %p12_p5 = scmp.ge.s32.totalorder %s15_s24, 6   ;;  %s1364_s19 = smov %s1260_s8 }
 0x1eb   : > { %s1365_s20 = smov %s1133_s22  ;;  %s1366_s21 = smov %s1137_s23 }
 0x1ec   : > { %s1367_s22 = smov %s1370_s25  ;;  %s1368_s23 = smov %s1374_s26 }
 0x1ed   :  { %14 = sbr.rel (!%p12_p5) target bundleno = 4 (0x4), region = 164 }

// kernel: tpu_custom_call.1
= control target key start
LH: loop header
LB: loop body
LE: loop exit
PB: predicated region body
PF: predicated region fallthrough
CT: control target
= control target key end

     0   :  { %s1193_s18 = smov 0   ;;  %s1195_s19 = smov 0   ;;  %s1344_s0 = inlined_call_operand.vmem [shape: f32[2,22,32], index: 0, kind: input, shape index: {}]   ;;  %s1345_s1 = inlined_call_operand.vmem [shape: f32[2,32,64], index: 1, kind: input, shape index: {}]   ;;  %s1346_s2 = inlined_call_operand.vmem [shape: f32[2,1,64], index: 2, kind: input, shape index: {}]   ;;  %s1347_s3 = inlined_call_operand.vmem [shape: f32[2,64,32], index: 3, kind: input, shape index: {}]   ;;  %s1348_s4 = inlined_call_operand.vmem [shape: f32[2,1,32], index: 4, kind: input, shape index: {}]   ;;  %s1349_s5 = inlined_call_operand.vmem [shape: f32[2,22,32], index: 5, kind: output, shape index: {}]  }
   0x1   :  { %s1197_s20 = smov 0   ;;  %s1199_s21 = smov 0  }
   0x2   :  { %s1201_s22 = smov 0   ;;  %s1203_s23 = smov 0  }
   0x3   :  { %s1205_s24 = smov 0  }
   0x4 LB: > { %s24_s25 = sadd.s32 1, %s1121_s22  ;;  %s27_s26 = sadd.s32 1, %s1125_s23  ;;  %s1129_s24 = sphi %s1205_s24, %s15_s24   ;;  %s1125_s23 = sphi %s1203_s23, %s1356_s23   ;;  %s1121_s22 = sphi %s1201_s22, %s1355_s22   ;;  %s1117_s21 = sphi %s1199_s21, %s1354_s21   ;;  %s1113_s20 = sphi %s1197_s20, %s1353_s20   ;;  %s1109_s19 = sphi %s1195_s19, %s1352_s19   ;;  %s1105_s18 = sphi %s1193_s18, %s1351_s18  }
   0x5   : > { %p25_p0 = scmp.ge.s32.totalorder %s24_s25, 2  ;;  %s832_s27 = sadd.s32 4294967295, %s1129_s24  }
   0x6   : > { %p178_p1 = scmp.ne.s32.totalorder %s1109_s19, %s1105_s18  ;;  %p179_p2 = scmp.eq.s32.totalorder %s832_s27, 3 }
   0x7   : > { %s1358_s25 = smov (%p25_p0, %s24_s25), 0  ;;  %s1360_s26 = smov (!%p25_p0, %s27_s26), %s1125_s23 }
   0x8   : > { %s164_s28 = ssub.s32 %s1121_s22, %s1358_s25  ;;  %p29_p3 = scmp.ge.s32.totalorder %s1360_s26, 2 }
   0x9   : > { %p836_p4 = scmp.ge.s32.totalorder %s1129_s24, 1  ;;  %p1237_p5 = por %p179_p2, %p178_p1 }
   0xa   : > { %p252_p6 = scmp.lt.s32.totalorder %s1129_s24, 5  ;;  %s1362_s26 = smov (%p29_p3, %s1360_s26), 0 }
   0xb   : > { %s163_s30 = ssub.s32 %s1125_s23, %s1362_s26  ;;  %s168_s7 = sadd.s32 1, %s1109_s19 }
   0xc   : > { %p253_p7 = pnand %p836_p4, %p252_p6  ;;  %s165_s6 = sor.u32 %s164_s28, %s163_s30 }
   0xd   : > { %p166_p8 = scmp.eq.s32.totalorder %s165_s6, 0  ;;  %p308_p9 = scmp.lt.s32.totalorder (!%p253_p7), %s1117_s21, 1 }
   0xe   : > { %256 = sbr.rel (%p253_p7) target bundleno = 489 (0x1e9), region = 40  ;;  %s1251_s9 = sshll.u32 (!%p253_p7), %s1113_s20, 1 }
   0xf   : > { %s1248_s8 = scalar_select %p166_p8, %s1109_s19, %s168_s7  }
  0x10   : > { %p310_p10 = scmp.lt.s32.totalorder (!%p253_p7), %s1251_s9, 2  ;;  %s300_s27 = sand.u32 (!%p253_p7), 1, %s1105_s18  }
  0x11   : > { %s837_s28 = sshll.u32 (!%p253_p7), %s300_s27, 4 }
  0x13   : > { %s1255_s10 = scalar_select %p308_p9, %s1117_s21, 1  ;;  %vm355_vm0 = vcmask 261120   ;;  %vm462_vm1 = vcmask 523264  }
  0x14   : > { %s311_s11 = scalar_select %p310_p10, %s1251_s9, 2 }
  0x15   : > { %s867_s12 = sshll.u32 %s1255_s10, 5  ;;  %s917_s13 = smul.u32 3, %s1255_s10 }
  0x16   : > { %s325_s16 = scalar_lea.vmem %s1345_s1, %s867_s12  ;;  %s868_s6 = sshll.u32 %s1255_s10, 6 }
  0x17   : > { %v347_v0 = vld [vmem:[%s325_s16 + $0x18] sm:$0xff]  ;;  %v346_v1 = vld [vmem:[%s325_s16 + $0x10] sm:$0xff]  ;;  %s313_s17 = sadd.s32 %s917_s13, %s311_s11  ;;  %v345_v2 = vld [vmem:[%s325_s16 + $0x8] sm:$0xff]  ;;  %s333_s12 = scalar_lea.vmem %s1347_s3, %s868_s6 }
  0x18   : > { %887 = vmatprep.subr.mxu0 %v347_v0  ;;  %s839_s20 = sshll.u32 %s313_s17, 3  ;;  %v344_v4 = vld [vmem:[%s325_s16] sm:$0xff]  ;;  %v454_v6 = vld [vmem:[%s333_s12 + $0x38] sm:$0xff]  ;;  %v453_v7 = vld [vmem:[%s333_s12 + $0x30] sm:$0xff]  ;;  %s328_s15 = scalar_lea.vmem %s1346_s2, %s1255_s10 }
  0x19   : > { %888 = vmatpush3.msra.mxu0 %v347_v0  ;;  %s315_s30 = scalar_lea.vmem %s1344_s0, %s839_s20  ;;  %898 = vmatprep.subr.mxu1 %v454_v6  ;;  %v452_v8 = vld [vmem:[%s333_s12 + $0x28] sm:$0xff]  ;;  %v451_v9 = vld [vmem:[%s333_s12 + $0x20] sm:$0xff]  ;;  %v450_v10 = vld [vmem:[%s333_s12 + $0x18] sm:$0xff]  ;;  %s336_s20 = scalar_lea.vmem %s1348_s4, %s1255_s10 }
  0x1a   : > { %889 = vmatprep.subr.mxu0 %v346_v1  ;;  %v1266_v3 = vld [vmem:[%s315_s30] sm:$0xff]  ;;  %v343_v5 = vld [vmem:[%s315_s30 + $0x8] sm:$0xff]  ;;  %899 = vmatpush3.msra.mxu1 %v454_v6  ;;  %v449_v11 = vld [vmem:[%s333_s12 + $0x10] sm:$0xff]  ;;  %s1284_s30 = scalar_lea.vmem [#allocation2], %s837_s28   ;;  %s556_s18 = ssub.s32 (%p1237_p5), 3, %s1251_s9 }
  0x1b   : > { %890 = vmatpush3.msra.mxu0 %v346_v1  ;;  %895 = vmatprep.mubr.msk.f32.mxu0 %vm355_vm0, %v1266_v3  ;;  %v448_v12 = vld [vmem:[%s333_s12 + $0x8] sm:$0xff]  ;;  %v447_v13 = vld [vmem:[%s333_s12] sm:$0xff]  ;;  %s918_s10 = smul.u32 (%p1237_p5), 3, %s1117_s21  ;;  %p557_p11 = scmp.lt.s32.totalorder (%p1237_p5), %s556_s18, 2 }
  0x1c   : > { %891 = vmatprep.subr.mxu0 %v345_v2  ;;  %900 = vmatprep.subr.mxu1 %v453_v7  ;;  %v844_v14 = vld [vmem:[%s328_s15] ss:$0 sm:$0xff] }
  0x1d   : > { %892 = vmatpush3.msra.mxu0 %v345_v2  ;;  %901 = vmatpush3.msra.mxu1 %v453_v7  ;;  %v847_v29 = vld [vmem:[%s336_s20] ss:$0 sm:$0xff]  ;;  %s562_s6 = sadd.s32 (%p1237_p5), %s918_s10, %s1251_s9 }
  0x1e   : > { %893 = vmatprep.subr.mxu0 %v344_v4  ;;  %902 = vmatprep.subr.mxu1 %v452_v8  ;;  %s854_s7 = sshll.u32 (%p1237_p5), %s562_s6, 3 }
  0x1f   : > { %894 = vmatpush3.msra.mxu0 %v344_v4  ;;  %903 = vmatpush3.msra.mxu1 %v452_v8  ;;  %s1302_s14 = scalar_lea.vmem (%p1237_p5), %s1349_s5, %s854_s7  }
  0x20   : > { %896 = vmatmul.mubr.msk.f32.vlgmr.msra.gmra.mxu0 %vm355_vm0, %v343_v5  ;;  %904 = vmatprep.subr.mxu1 %v451_v9 }
  0x21   : > { %905 = vmatpush3.msra.mxu1 %v451_v9 }
  0x22   : > { %906 = vmatprep.subr.mxu1 %v450_v10 }
  0x23   : > { %907 = vmatpush3.msra.mxu1 %v450_v10 }
  0x24   : > { %908 = vmatprep.subr.mxu1 %v449_v11 }
  0x25   : > { %909 = vmatpush3.msra.mxu1 %v449_v11 }
  0x26   : > { %910 = vmatprep.subr.mxu1 %v448_v12 }
  0x27   : > { %911 = vmatpush3.msra.mxu1 %v448_v12 }
  0x28   : > { %912 = vmatprep.subr.mxu1 %v447_v13 }
  0x29   : > { %913 = vmatpush3.msra.mxu1 %v447_v13 }
  0xe0   : > { %v897_v15 = vpop.f32.mrf.mxu0 }
  0xe1   : > { %v434_v16 = vadd.f32 %v897_v15, %v844_v14 }
  0xe2   : > { %v428_v17 = vpop.f32.mrf.mxu0 }
  0xe3   : > { %v440_v18 = vmul.f32 0.70710677, %v434_v16  ;;  %v429_v19 = vadd.f32 %v844_v14, %v428_v17  ;;  %v438_v26 = vmul.f32 0.5, %v434_v16 }
  0xe5   : > { %1039 = verf.f32 %v440_v18  ;;  %v439_v20 = vmul.f32 0.70710677, %v429_v19  ;;  %v437_v24 = vmul.f32 0.5, %v429_v19 }
  0xe7   : > { %1041 = verf.f32 %v439_v20 }
  0xf2   : > { %v1040_v21 = vpop.eup %1039 }
  0xf3   : > { %v444_v23 = vadd.f32 1.0, %v1040_v21 }
  0xf4   : > { %v1042_v22 = vpop.eup %1041 }
  0xf5   : > { %v443_v25 = vadd.f32 1.0, %v1042_v22  ;;  %v446_v28 = vmul.f32 %v444_v23, %v438_v26 }
  0xf7   : > { %v445_v27 = vmul.f32 %v443_v25, %v437_v24 }
  0xf9   : > { %914 = vmatprep.mubr.msk.f32.mxu1 %vm462_vm1, %v445_v27 }
  0xfa   : > { %915 = vmatmul.mubr.msk.f32.vlgmr.msra.gmra.mxu1 %vm462_vm1, %v446_v28 }
 0x1ba   : > { %v916_v30 = vpop.f32.mrf.mxu1 }
 0x1bb   : > { %v541_v31 = vadd.f32 %v916_v30, %v847_v29 }
 0x1bc   : > { %v535_v32 = vpop.f32.mrf.mxu1 }
 0x1bd   : > { %v545_v33 = vadd.f32 %v541_v31, %v343_v5  ;;  %v536_v34 = vadd.f32 %v847_v29, %v535_v32  ;;  %554 = sbr.rel (!%p1237_p5) target bundleno = 489 (0x1e9), region = 44 }
 0x1bf   : > { %547 = vst.msk [vmem:[%s1284_s30 + $0x8] sm:$0xff] %vm355_vm0, %v545_v33  ;;  %v544_v35 = vadd.f32 %v536_v34, %v1266_v3 }
 0x1c1   : > { %546 = vst.msk [vmem:[%s1284_s30] sm:$0xff] %vm355_vm0, %v544_v35 }
 0x1c2   : > { %s1364_s18 = smov (!%p557_p11, %s556_s18), 2 }
 0x1c3   : > { %s852_s11 = sshll.u32 %s1364_s18, 7 }
 0x1c4   : > { %p855_p12 = scmp.eq.s32.totalorder %s852_s11, 0 }
 0x1c5   : > { %s1305_s29 = sshrl.u32 (!%p855_p12), %s1364_s18, 1 }
 0x1c6   : > { %567 = sbr.rel (%p855_p12) target bundleno = 489 (0x1e9), region = 48  ;;  %p856_p13 = scmp.le.s32.totalorder (!%p855_p12), %s1305_s29, 0 }
 0x1cb   : > { %753 = sbr.rel (%p856_p13) target bundleno = 472 (0x1d8), region = 136  ;;  %s1131_s21 = smov (!%p856_p13), %s1302_s14  }
 0x1cc   : > { %s1135_s9 = smov (!%p856_p13), %s1284_s30   ;;  %s1139_s15 = smov (!%p856_p13), 0  }
 0x1cd   : > { %s1143_s16 = smov (!%p856_p13), 0  }
 0x1d0 LB: >> { %v632_v36 = vld [vmem:[%s1137_s9] sm:$0xff]  ;;  %v634_v37 = vld [vmem:[%s1137_s9 + $0x8] sm:$0xff]  ;;  %s636_s17 = sadd.s32 1, %s1141_s15  ;;  %s626_s16 = sadd.s32 1, %s1145_s16   ;;  %s1145_s16 = sphi %s1143_s16, %s626_s16   ;;  %s1141_s15 = sphi %s1139_s15, %s1140_s15   ;;  %s1137_s9 = sphi %s1135_s9, %s641_s9   ;;  %s1133_s21 = sphi %s1131_s21, %s642_s21  }
 0x1d1   : >> { %633 = vst [vmem:[%s1133_s21] sm:$0xff] %v632_v36  ;;  %635 = vst [vmem:[%s1133_s21 + $0x8] sm:$0xff] %v634_v37  ;;  %p637_p0 = scmp.ge.s32.totalorder %s636_s17, %s1305_s29  ;;  %p625_p1 = scmp.ge.s32.totalorder %s626_s16, %s1305_s29 }
 0x1d3   : >> { %s1366_s17 = smov (%p637_p0, %s636_s17), 0  ;;  %628 = sbr.rel (!%p625_p1) target bundleno = 464 (0x1d0), region = 142 }
 0x1d4   : >> { %s857_s20 = sshll.u32 %s1366_s17, 4  ;;  %s1140_s15 = smov %s1366_s17  }
 0x1d5   : >> { %s641_s9 = scalar_lea.vmem %s1284_s30, %s857_s20 [#allocation2]   ;;  %s642_s21 = scalar_lea.vmem %s1302_s14, %s857_s20  }
 0x1d8 PF: > { %s1315_s27 = sand.u32 1, %s1364_s18   ;;  %s869_s28 = sshll.u32 %s1305_s29, 4 }
 0x1d9   : > { %s647_s10 = scalar_lea.vmem %s1284_s30, %s869_s28 [#allocation2]   ;;  %s649_s6 = scalar_lea.vmem %s1302_s14, %s869_s28  }
 0x1da   : > { %p862_p2 = scmp.le.s32.totalorder %s1315_s27, 0 }
 0x1db   : > { %s1147_s7 = smov (!%p862_p2), %s649_s6   ;;  %s1151_s11 = smov (!%p862_p2), %s647_s10  }
 0x1dc   : > { %767 = sbr.rel (%p862_p2) target bundleno = 489 (0x1e9), region = 147  ;;  %s1155_s12 = smov (!%p862_p2), 0  }
 0x1dd   : > { %s1159_s13 = smov (!%p862_p2), 0  }
 0x1e1 LB: >> { %v659_v38 = vld [vmem:[%s1153_s11] sm:$0xff]  ;;  %s661_s18 = sadd.s32 1, %s1157_s12  ;;  %s653_s13 = sadd.s32 1, %s1161_s13   ;;  %s1161_s13 = sphi %s1159_s13, %s653_s13   ;;  %s1157_s12 = sphi %s1155_s12, %s1156_s12   ;;  %s1153_s11 = sphi %s1151_s11, %s666_s11   ;;  %s1149_s7 = sphi %s1147_s7, %s667_s7  }
 0x1e2   : >> { %660 = vst [vmem:[%s1149_s7] sm:$0xff] %v659_v38  ;;  %p662_p3 = scmp.ge.s32.totalorder %s661_s18, %s1315_s27  ;;  %p652_p4 = scmp.ge.s32.totalorder %s653_s13, %s1315_s27 }
 0x1e4   : >> { %s1368_s18 = smov (%p662_p3, %s661_s18), 0  ;;  %655 = sbr.rel (!%p652_p4) target bundleno = 481 (0x1e1), region = 153 }
 0x1e5   : >> { %s863_s30 = sshll.u32 %s1368_s18, 3  ;;  %s1156_s12 = smov %s1368_s18  }
 0x1e6   : >> { %s666_s11 = scalar_lea.vmem %s647_s10, %s863_s30 [#allocation2]   ;;  %s667_s7 = scalar_lea.vmem %s649_s6, %s863_s30  }
 0x1e9 PF: > { %s15_s24 = sadd.s32 1, %s1129_s24   ;;  %s1351_s18 = smov %s1109_s19 }
 0x1ea   : > { %p12_p5 = scmp.ge.s32.totalorder %s15_s24, 6   ;;  %s1352_s19 = smov %s1248_s8 }
 0x1eb   : > { %s1353_s20 = smov %s1121_s22  ;;  %s1354_s21 = smov %s1125_s23 }
 0x1ec   : > { %s1355_s22 = smov %s1358_s25  ;;  %s1356_s23 = smov %s1362_s26 }
 0x1ed   :  { %14 = sbr.rel (!%p12_p5) target bundleno = 4 (0x4), region = 164 }

</bundles_post_ra>
